<compile_context>
chip_gen: v6e
topology: v6e:2x2x1
jax: 0.10.0
libtpu: 0.0.40
codegen_flags: <defaults>
</compile_context>

<pallas_src>
from functools import partial

import jax
import jax.numpy as jnp
from jax import lax
from jax.experimental import pallas as pl
from jax.experimental.pallas import tpu as pltpu


def _conv_relu_kernel(x_ref, wb_ref, b_ref, o_ref):
    """One (batch n, H-tile ht) grid step of ReLU(conv3x3(x) + b).

    x_ref : (1, H+2, W*Cin) f32    H-halo'd image of batch element n, rows lane-dense
                                   (channel fastest). Block index depends only on n, so
                                   it is DMA'd once per batch element.
    wb_ref: (3, W*Cin, W*Cout) bf16  banded weights (kw taps + pad=1 W-padding folded in).
    b_ref : (1, W*Cout) f32        lane-dense bias row (bias tiled over W).
    o_ref : (1, TH, W*Cout) f32    lane-dense output tile (full-lane stores).
    """
    TH = o_ref.shape[1]
    ht = pl.program_id(1)
    r0 = pl.multiple_of(ht * TH, TH)     # padded-row index of this tile's tap-0 window

    acc = jnp.zeros(o_ref.shape[1:], jnp.float32)
    for kh in range(3):
        # Direct dynamic row-window load (no concat / in-register slices). Tap kh of
        # output rows [ht*TH, ht*TH+TH) reads padded rows [r0+kh, r0+kh+TH); the 1-row
        # zero halo added in the wrapper keeps every window in-bounds, so no masks.
        xs = x_ref[0, pl.ds(r0 + kh, TH), :].astype(jnp.bfloat16)   # bf16 MXU operand
        acc = acc + jnp.dot(xs, wb_ref[kh], preferred_element_type=jnp.float32)

    acc = acc + b_ref[...]                      # f32 epilogue: bias broadcast over rows
    o_ref[0] = jnp.maximum(acc, 0.0).astype(o_ref.dtype)   # fused ReLU, full-lane store


def _make_banded_weights(w_oihw, W):
    """Fold the kw taps + pad=1 W-padding of a 3x3 conv into 3 (W*Cin, W*Cout) matrices.

    wband[kh, wi*Cin+ci, wo*Cout+co] = w[co, ci, kh, wi-wo+1] if 0 <= wi-wo+1 <= 2 else 0
    so that  out_row(h) = sum_kh x_row(h+kh-1) @ wband[kh]  is exactly the conv.

    TODO(synk): at production sizes (real W, Cin/Cout >= 64) this inflates MXU FLOPs by
    ~W/3x and weight bytes by ~W^2/3x — switch to a channel-on-lanes NHWC formulation
    (9 dots of (TH*W, Cin) x (Cin, Cout) with kw shifts done by pltpu.roll on the XLU).
    """
    w_hwio = jnp.transpose(w_oihw, (2, 3, 1, 0))             # (3, 3, Cin, Cout)
    Cin, Cout = w_hwio.shape[2], w_hwio.shape[3]
    wi = jnp.arange(W)[:, None]                              # input column index
    wo = jnp.arange(W)[None, :]                              # output column index
    kw = wi - wo + 1                                         # (W, W)
    valid = (kw >= 0) & (kw <= 2)
    g = w_hwio[:, jnp.clip(kw, 0, 2)]                        # (3, W, W, Cin, Cout)
    g = jnp.where(valid[None, :, :, None, None], g, 0.0)
    return jnp.transpose(g, (0, 1, 3, 2, 4)).reshape(3, W * Cin, W * Cout)


def prepare_conv_block_params(w_oihw, bias, W):
    """Build the kernel's weight/bias operands ONCE at parameter-load time (hoisted off
    the per-forward hot path). Banded weights ship as bf16 (MXU-native, half the DMA)."""
    Cout, Cin = w_oihw.shape[0], w_oihw.shape[1]
    if 3 * (W * Cin) * (W * Cout) * 2 > 16 * 1024 * 1024:
        raise NotImplementedError(
            "Banded-weight formulation is for small W*C only; use the NHWC/pltpu.roll "
            "formulation for production shapes (see TODO in _make_banded_weights).")
    wband = _make_banded_weights(w_oihw.astype(jnp.float32), W).astype(jnp.bfloat16)
    brow = jnp.tile(bias.astype(jnp.float32), W).reshape(1, W * Cout)
    return wband, brow


def _pick_tile_h(H, W, Cin, Cout, vmem_budget_bytes):
    """Largest multiple-of-8 H tile that divides H, fits the budget, capped at 512.

    Bigger lane-dense tiles are the single biggest roofline lever (TH=8 fills <7% of the
    MXU M dim). Re-derive per generation: 48 MiB budget is safe on v5e/v6e/v7x; raise
    toward ~96 MiB on v6e (128 MiB physical), keep <= ~56 MiB on v7x (64 MiB physical).
    """
    cands = [t for t in range(8, min(H, 512) + 1, 8) if H % t == 0]
    if not cands:
        return H   # H not a multiple of 8: single full-H tile (block == full dim is legal)
    fixed = (2 * (H + 2) * W * Cin * 4         # double-buffered halo'd image (f32)
             + 3 * (W * Cin) * (W * Cout) * 2  # bf16 banded weights (single copy)
             + W * Cout * 4)                   # bias row
    fit = [t for t in cands if fixed + 2 * t * W * Cout * 4 <= vmem_budget_bytes]
    return max(fit) if fit else min(cands)


def _const_spec(block_shape, index_map):
    """Spec for operands whose block never changes across the grid: single-buffer them
    (saves VMEM, matters most on v7x's 64 MiB). Falls back to a default (double-buffered)
    spec on jax versions without BlockSpec.pipeline_mode."""
    try:
        return pl.BlockSpec(block_shape, index_map, pipeline_mode=pl.Buffered(1))
    except (AttributeError, TypeError):
        return pl.BlockSpec(block_shape, index_map)


@partial(jax.jit, static_argnames=("tile_h", "vmem_limit_bytes"))
def conv_block_forward(x_nchw, wband, bias_row, *, tile_h=None,
                       vmem_limit_bytes=48 * 1024 * 1024):
    """ConvBlock.forward: ReLU(Conv2d(x, k=3, s=1, p=1) + b).

    x_nchw: (N, Cin, H, W) f32; wband/bias_row from prepare_conv_block_params.
    Returns (N, Cout, H, W) f32.
    """
    N, Cin, H, W = x_nchw.shape
    WCi, WCo = W * Cin, wband.shape[2]
    Cout = WCo // W
    assert wband.shape == (3, WCi, WCo) and bias_row.shape == (1, WCo)

    TH = tile_h if tile_h is not None else _pick_tile_h(H, W, Cin, Cout, vmem_limit_bytes)
    # Guard the tiling: a non-divisor TH would silently drop output rows; a TH that is
    # neither a multiple of 8 nor the full H violates the (8, 128) block constraint.
    assert H % TH == 0, f"tile_h={TH} must divide H={H}"
    assert TH % 8 == 0 or TH == H, f"tile_h={TH} must be a multiple of 8 (or equal H)"
    HT = H // TH

    # Layout glue (module contract is NCHW): one fused pass producing lane-dense rows with
    # a 1-row zero halo in H, so the kernel's tap loads are plain in-bounds row windows.
    # In a full NHWC/bf16 pipeline these transposes would be dropped between layers.
    x2d = jnp.transpose(x_nchw, (0, 2, 3, 1)).reshape(N, H, WCi)
    x2d = jnp.pad(x2d, ((0, 0), (1, 1), (0, 0)))              # (N, H+2, W*Cin)

    out3 = pl.pallas_call(
        _conv_relu_kernel,
        out_shape=jax.ShapeDtypeStruct((N, H, WCo), x_nchw.dtype),
        grid_spec=pltpu.PrefetchScalarGridSpec(
            num_scalar_prefetch=0,
            grid=(N, HT),                 # both parallel: shards across v7x's 2 TCs
            in_specs=[
                # Full halo'd image per batch element; re-DMA'd only when n changes.
                # TODO(synk): for large H replace with a (TH+2)-row halo tile (pl.Element
                # on H or manual make_async_copy) to stay inside v7x's 64 MiB VMEM.
                pl.BlockSpec((1, H + 2, WCi), lambda n, h: (n, 0, 0)),
                _const_spec((3, WCi, WCo), lambda n, h: (0, 0, 0)),
                _const_spec((1, WCo), lambda n, h: (0, 0)),
            ],
            out_specs=pl.BlockSpec((1, TH, WCo), lambda n, h: (n, h, 0)),
        ),
        compiler_params=pltpu.CompilerParams(
            dimension_semantics=("parallel", "parallel"),
            vmem_limit_bytes=vmem_limit_bytes,
        ),
    )(x2d, wband, bias_row)

    return jnp.transpose(out3.reshape(N, H, W, Cout), (0, 3, 1, 2))   # back to NCHW


def _reference(x_nchw, w_oihw, bias):
    out = lax.conv_general_dilated(
        x_nchw, w_oihw,
        window_strides=(1, 1),
        padding=((1, 1), (1, 1)),
        dimension_numbers=("NCHW", "OIHW", "NCHW"),
    )
    return jnp.maximum(out + bias[None, :, None, None], 0.0)


# TODO(synk): BatchNorm2d branch of ConvBlock not implemented (module default batch_norm=False).

if __name__ == "__main__":
    key = jax.random.PRNGKey(0)
    kx, kw, kb = jax.random.split(key, 3)

    N, Cin, H, W = 2, 4, 16, 16
    Cout = 8

    x = jax.random.normal(kx, (N, Cin, H, W), dtype=jnp.float32)
    # Deterministic synthetic parameters matching nn.Conv2d(inc=4, outc=8, k=3) shapes.
    w = jax.random.normal(kw, (Cout, Cin, 3, 3), dtype=jnp.float32) * 0.1
    b = jax.random.normal(kb, (Cout,), dtype=jnp.float32) * 0.1

    # Built once, off the per-forward hot path.
    wband, brow = prepare_conv_block_params(w, b, W)

    out = jax.block_until_ready(conv_block_forward(x, wband, brow))          # TH = 16
    out_t8 = jax.block_until_ready(conv_block_forward(x, wband, brow, tile_h=8))  # 2 H tiles

    # The kernel rounds x and w to bf16 for the MXU (f32 accumulation); compare against a
    # reference fed the same bf16-rounded operands.
    x_r = x.astype(jnp.bfloat16).astype(jnp.float32)
    w_r = w.astype(jnp.bfloat16).astype(jnp.float32)
    ref = _reference(x_r, w_r, b)

    assert out.shape == (N, Cout, H, W)
    assert jnp.allclose(out, ref, atol=2e-2, rtol=2e-2), "mismatch vs reference conv"
    assert jnp.allclose(out_t8, ref, atol=2e-2, rtol=2e-2), "mismatch vs reference (tile_h=8)"

    print("KERNEL_OK")
</pallas_src>

<mosaic_0001>
module attributes {stable_mosaic.version = 11 : i64} {
  func.func @_conv_relu_kernel(%arg0: i32, %arg1: i32, %arg2: memref<1x18x64xf32, #tpu.memory_space<vmem>>, %arg3: memref<3x64x128xbf16, #tpu.memory_space<vmem>>, %arg4: memref<1x128xf32, #tpu.memory_space<vmem>>, %arg5: memref<1x16x128xf32, #tpu.memory_space<vmem>>) attributes {dimension_semantics = [#tpu.dimension_semantics<parallel>, #tpu.dimension_semantics<parallel>], iteration_bounds = array<i64: 2, 1>, scalar_prefetch = 0 : i64, scratch_operands = 0 : i64, tpu.core_type = #tpu.core_type<tc>, window_params = [{transform_indices = @transform_0, window_bounds = array<i64: 1, 18, 64>}, {pipeline_mode = #tpu.pipeline_mode<synchronous>, transform_indices = @transform_1, window_bounds = array<i64: 3, 64, 128>}, {pipeline_mode = #tpu.pipeline_mode<synchronous>, transform_indices = @transform_2, window_bounds = array<i64: 1, 128>}, {transform_indices = @transform_3, window_bounds = array<i64: 1, 16, 128>}]} {
    %c16_i32 = arith.constant 16 : i32
    %0 = arith.muli %arg1, %c16_i32 : i32
    %1 = tpu.assume_multiple %0, 16 : i32
    %cst = arith.constant 0.000000e+00 : f32
    %2 = vector.broadcast %cst : f32 to vector<16x128xf32>
    %c0_i32 = arith.constant 0 : i32
    %3 = arith.addi %1, %c0_i32 : i32
    %c0 = arith.constant 0 : index
    %4 = arith.index_cast %3 : i32 to index
    %c0_0 = arith.constant 0 : index
    %5 = vector.load %arg2[%c0, %4, %c0_0] : memref<1x18x64xf32, #tpu.memory_space<vmem>>, vector<1x16x64xf32>
    %6 = vector.shape_cast %5 : vector<1x16x64xf32> to vector<16x64xf32>
    %7 = arith.truncf %6 : vector<16x64xf32> to vector<16x64xbf16>
    %c0_1 = arith.constant 0 : index
    %c0_2 = arith.constant 0 : index
    %c0_3 = arith.constant 0 : index
    %8 = vector.load %arg3[%c0_1, %c0_2, %c0_3] : memref<3x64x128xbf16, #tpu.memory_space<vmem>>, vector<1x64x128xbf16>
    %9 = vector.shape_cast %8 : vector<1x64x128xbf16> to vector<64x128xbf16>
    %cst_4 = arith.constant dense<0.000000e+00> : vector<16x128xf32>
    %10 = tpu.matmul %7, %9, %cst_4 {dimension_numbers = #tpu.dot_dimension_numbers<[1], [0], [0], [1], [0, 0, 1, 1], [], []>} : vector<16x64xbf16>, vector<64x128xbf16>, vector<16x128xf32> -> vector<16x128xf32>
    %11 = arith.addf %2, %10 : vector<16x128xf32>
    %c1_i32 = arith.constant 1 : i32
    %12 = arith.addi %1, %c1_i32 : i32
    %c0_5 = arith.constant 0 : index
    %13 = arith.index_cast %12 : i32 to index
    %c0_6 = arith.constant 0 : index
    %14 = vector.load %arg2[%c0_5, %13, %c0_6] : memref<1x18x64xf32, #tpu.memory_space<vmem>>, vector<1x16x64xf32>
    %15 = vector.shape_cast %14 : vector<1x16x64xf32> to vector<16x64xf32>
    %16 = arith.truncf %15 : vector<16x64xf32> to vector<16x64xbf16>
    %c1 = arith.constant 1 : index
    %c0_7 = arith.constant 0 : index
    %c0_8 = arith.constant 0 : index
    %17 = vector.load %arg3[%c1, %c0_7, %c0_8] : memref<3x64x128xbf16, #tpu.memory_space<vmem>>, vector<1x64x128xbf16>
    %18 = vector.shape_cast %17 : vector<1x64x128xbf16> to vector<64x128xbf16>
    %cst_9 = arith.constant dense<0.000000e+00> : vector<16x128xf32>
    %19 = tpu.matmul %16, %18, %cst_9 {dimension_numbers = #tpu.dot_dimension_numbers<[1], [0], [0], [1], [0, 0, 1, 1], [], []>} : vector<16x64xbf16>, vector<64x128xbf16>, vector<16x128xf32> -> vector<16x128xf32>
    %20 = arith.addf %11, %19 : vector<16x128xf32>
    %c2_i32 = arith.constant 2 : i32
    %21 = arith.addi %1, %c2_i32 : i32
    %c0_10 = arith.constant 0 : index
    %22 = arith.index_cast %21 : i32 to index
    %c0_11 = arith.constant 0 : index
    %23 = vector.load %arg2[%c0_10, %22, %c0_11] : memref<1x18x64xf32, #tpu.memory_space<vmem>>, vector<1x16x64xf32>
    %24 = vector.shape_cast %23 : vector<1x16x64xf32> to vector<16x64xf32>
    %25 = arith.truncf %24 : vector<16x64xf32> to vector<16x64xbf16>
    %c2 = arith.constant 2 : index
    %c0_12 = arith.constant 0 : index
    %c0_13 = arith.constant 0 : index
    %26 = vector.load %arg3[%c2, %c0_12, %c0_13] : memref<3x64x128xbf16, #tpu.memory_space<vmem>>, vector<1x64x128xbf16>
    %27 = vector.shape_cast %26 : vector<1x64x128xbf16> to vector<64x128xbf16>
    %cst_14 = arith.constant dense<0.000000e+00> : vector<16x128xf32>
    %28 = tpu.matmul %25, %27, %cst_14 {dimension_numbers = #tpu.dot_dimension_numbers<[1], [0], [0], [1], [0, 0, 1, 1], [], []>} : vector<16x64xbf16>, vector<64x128xbf16>, vector<16x128xf32> -> vector<16x128xf32>
    %29 = arith.addf %20, %28 : vector<16x128xf32>
    %c0_15 = arith.constant 0 : index
    %c0_16 = arith.constant 0 : index
    %30 = vector.load %arg4[%c0_15, %c0_16] : memref<1x128xf32, #tpu.memory_space<vmem>>, vector<1x128xf32>
    %31 = vector.broadcast %30 : vector<1x128xf32> to vector<16x128xf32>
    %32 = arith.addf %29, %31 : vector<16x128xf32>
    %cst_17 = arith.constant 0.000000e+00 : f32
    %33 = vector.broadcast %cst_17 : f32 to vector<16x128xf32>
    %34 = arith.maximumf %32, %33 : vector<16x128xf32>
    %c0_18 = arith.constant 0 : index
    %c0_19 = arith.constant 0 : index
    %c0_20 = arith.constant 0 : index
    %35 = vector.load %arg5[%c0_18, %c0_19, %c0_20] : memref<1x16x128xf32, #tpu.memory_space<vmem>>, vector<1x16x128xf32>
    %36 = vector.shape_cast %35 : vector<1x16x128xf32> to vector<16x128xf32>
    %37 = vector.shape_cast %34 : vector<16x128xf32> to vector<1x16x128xf32>
    tpu.vector_store %arg5[%c0_18, %c0_19, %c0_20], %37 {strides = array<i32>} : memref<1x16x128xf32, #tpu.memory_space<vmem>>, vector<1x16x128xf32>,
    return
  }
  func.func @transform_0(%arg0: i32, %arg1: i32) -> (i32, i32, i32) {
    %c0_i32 = arith.constant 0 : i32
    %c0_i32_0 = arith.constant 0 : i32
    %c0_i32_1 = arith.constant 0 : i32
    return %arg0, %c0_i32, %c0_i32_0 : i32, i32, i32
  }
  func.func @transform_1(%arg0: i32, %arg1: i32) -> (i32, i32, i32) {
    %c0_i32 = arith.constant 0 : i32
    %c0_i32_0 = arith.constant 0 : i32
    %c0_i32_1 = arith.constant 0 : i32
    %c0_i32_2 = arith.constant 0 : i32
    return %c0_i32, %c0_i32_0, %c0_i32_1 : i32, i32, i32
  }
  func.func @transform_2(%arg0: i32, %arg1: i32) -> (i32, i32) {
    %c0_i32 = arith.constant 0 : i32
    %c0_i32_0 = arith.constant 0 : i32
    %c0_i32_1 = arith.constant 0 : i32
    return %c0_i32, %c0_i32_0 : i32, i32
  }
  func.func @transform_3(%arg0: i32, %arg1: i32) -> (i32, i32, i32) {
    %c0_i32 = arith.constant 0 : i32
    %c0_i32_0 = arith.constant 0 : i32
    return %arg0, %arg1, %c0_i32 : i32, i32, i32
  }
}

</mosaic_0001>

<bundles_post_ra>
// kernel: conv_block_forward.1
= control target key start
LH: loop header
LB: loop body
LE: loop exit
PB: predicated region body
PF: predicated region fallthrough
CT: control target
= control target key end

     0   :  { %s728_s12 = smov 0   ;;  %s730_s13 = smov 0   ;;  %s810_s0 = inlined_call_operand.vmem [shape: f32[2,18,64], index: 0, kind: input, shape index: {}]   ;;  %s811_s1 = inlined_call_operand.vmem [shape: bf16[3,64,128], index: 1, kind: input, shape index: {}]   ;;  %s812_s2 = inlined_call_operand.vmem [shape: f32[1,128], index: 2, kind: input, shape index: {}]   ;;  %s813_s3 = inlined_call_operand.vmem [shape: f32[2,16,128], index: 3, kind: output, shape index: {}]  }
   0x1   :  { %s732_s14 = smov 0  }
   0x2 LB: > { %s25_s15 = sadd.s32 1, %s700_s13  ;;  %p549_p0 = scmp.ge.s32.totalorder %s704_s14, 1  ;;  %s704_s14 = sphi %s732_s14, %s13_s14   ;;  %s700_s13 = sphi %s730_s13, %s815_s13   ;;  %s696_s12 = sphi %s728_s12, %s814_s12  }
   0x3   : > { %p27_p1 = scmp.ge.s32.totalorder %s25_s15, 2  ;;  %p151_p2 = scmp.lt.s32.totalorder %s704_s14, 3 }
   0x5   : > { %s817_s15 = smov (%p27_p1, %s25_s15), 0  ;;  %p152_p3 = pnand %p549_p0, %p151_p2 }
   0x6   : > { %p179_p4 = scmp.lt.s32.totalorder (!%p152_p3), %s696_s12, 1 }
   0x7   : > { %155 = sbr.rel (%p152_p3) target bundleno = 249 (0xf9), region = 32 }
   0xc   : > { %v670_v0 = vld [vmem:[%s811_s1 + $0x38] sm:$0xff]   ;;  %v706_v1 = vmov 0.0   ;;  %v672_v3 = vld [vmem:[%s811_s1 + $0x30] sm:$0xff]   ;;  %vm707_vm0 = vmmov 0   ;;  %s819_s12 = smov (!%p179_p4, %s696_s12), 1  ;;  %v674_v5 = vld [vmem:[%s811_s1 + $0x28] sm:$0xff]  }
   0xd   : > { %607 = vmatprep.subr.bf16.mxu0 %v706_v1  ;;  %619 = vmatprep.subr.bf16.mxu1 %v706_v1  ;;  %v671_v2 = vld [vmem:[%s811_s1 + $0x18] sm:$0xff]   ;;  %v673_v4 = vld [vmem:[%s811_s1 + $0x10] sm:$0xff]   ;;  %s643_s26 = smul.u32 24, %s819_s12  ;;  %v675_v6 = vld [vmem:[%s811_s1 + $0x8] sm:$0xff]   ;;  %vm246_vm1 = vcmask 523264   ;;  %s591_s23 = sshll.u32 %s819_s12, 4 }
   0xe   : > { %608 = vmatpush3.bf16.msra.mxu0 %v670_v0  ;;  %615 = vmatprep.mubr.msk.bf16.mxu0 %vm707_vm0, %v706_v1  ;;  %v676_v7 = vld [vmem:[%s811_s1 + $0x20] sm:$0xff]   ;;  %v678_v15 = vld [vmem:[%s811_s1 + $0x58] sm:$0xff]   ;;  %v679_v16 = vld [vmem:[%s811_s1 + $0x50] sm:$0xff]  }
   0xf   : > { %620 = vmatpush3.bf16.msra.mxu1 %v671_v2  ;;  %609 = vmatprep.subr.bf16.mxu0 %v706_v1  ;;  %s183_s6 = scalar_lea.vmem %s810_s0, %s643_s26  ;;  %v677_v8 = vld [vmem:[%s811_s1] sm:$0xff]   ;;  %v680_v17 = vld [vmem:[%s811_s1 + $0x48] sm:$0xff]   ;;  %s192_s26 = scalar_lea.vmem %s813_s3, %s591_s23 }
  0x10   : > { %621 = vmatprep.subr.bf16.mxu1 %v706_v1  ;;  %627 = vmatprep.mubr.msk.bf16.mxu1 %vm707_vm0, %v706_v1  ;;  %v553_v9 = vld [vmem:[%s183_s6 + $0x1] sm:$0xff]  ;;  %v554_v10 = vld [vmem:[%s183_s6 + $0x9] sm:$0xff]  ;;  %v588_v32 = vld [vmem:[%s812_s2] ss:$0 sm:$0xff] }
  0x11   : > { %v197_v11 = vld [vmem:[%s183_s6] sm:$0xff]  ;;  %v198_v12 = vld [vmem:[%s183_s6 + $0x8] sm:$0xff]  ;;  %v212_v13 = vpack.c.bf16 %v554_v10, %v553_v9 }
  0x12   : > { %610 = vmatpush3.bf16.msra.mxu0 %v672_v3  ;;  %v199_v14 = vpack.c.bf16 %v198_v12, %v197_v11  ;;  %v681_v18 = vld [vmem:[%s811_s1 + $0x40] sm:$0xff]   ;;  %v574_v20 = vld [vmem:[%s183_s6 + $0xa] sm:$0xff] }
  0x13   : > { %622 = vmatpush3.bf16.msra.mxu1 %v673_v4  ;;  %611 = vmatprep.subr.bf16.mxu0 %v706_v1  ;;  %v573_v19 = vld [vmem:[%s183_s6 + $0x2] sm:$0xff] }
  0x14   : > { %623 = vmatprep.subr.bf16.mxu1 %v706_v1  ;;  %v363_v21 = vpack.c.bf16 %v574_v20, %v573_v19 }
  0x16   : > { %612 = vmatpush3.bf16.msra.mxu0 %v674_v5 }
  0x17   : > { %624 = vmatpush3.bf16.msra.mxu1 %v675_v6  ;;  %613 = vmatprep.subr.bf16.mxu0 %v706_v1 }
  0x18   : > { %625 = vmatprep.subr.bf16.mxu1 %v706_v1 }
  0x1a   : > { %614 = vmatpush3.bf16.msra.mxu0 %v676_v7 }
  0x1b   : > { %626 = vmatpush3.bf16.msra.mxu1 %v677_v8  ;;  %631 = vmatprep.subr.bf16.mxu0 %v706_v1 }
  0x1d   : > { %616 = vmatmul.mubr.msk.bf16.vlgmr.msra.gmra.mxu0 %vm246_vm1, %v212_v13 }
  0x1e   : > { %628 = vmatmul.mubr.msk.bf16.vlgmr.msra.gmra.mxu1 %vm246_vm1, %v199_v14  ;;  %632 = vmatpush3.bf16.msra.mxu0 %v678_v15 }
  0x1f   : > { %633 = vmatprep.subr.bf16.mxu0 %v706_v1  ;;  %639 = vmatprep.mubr.msk.bf16.mxu0 %vm707_vm0, %v706_v1 }
  0x22   : > { %634 = vmatpush3.bf16.msra.mxu0 %v679_v16 }
  0x23   : > { %635 = vmatprep.subr.bf16.mxu0 %v706_v1 }
  0x26   : > { %636 = vmatpush3.bf16.msra.mxu0 %v680_v17 }
  0x27   : > { %637 = vmatprep.subr.bf16.mxu0 %v706_v1 }
  0x2a   : > { %638 = vmatpush3.bf16.msra.mxu0 %v681_v18 }
  0x2d   : > { %640 = vmatmul.mubr.msk.bf16.vlgmr.msra.gmra.mxu0 %vm246_vm1, %v363_v21 }
  0xdd   : > { %v284_v22 = vpop.f32.mrf.mxu0 }
  0xde   : > { %v352_v23 = vpop.f32.mrf.mxu1 }
  0xdf   : > { %v617_v24 = vpop.f32.mrf.mxu0  ;;  %v353_v30 = vadd.f32 %v352_v23, %v284_v22 }
  0xe0   : > { %v629_v25 = vpop.f32.mrf.mxu1 }
  0xe1   : > { %v287_v26 = vpop.f32.mrf.mxu0 }
  0xe2   : > { %v355_v27 = vpop.f32.mrf.mxu1 }
  0xe3   : > { %v618_v28 = vpop.f32.mrf.mxu0  ;;  %v356_v35 = vadd.f32 %v355_v27, %v287_v26 }
  0xe4   : > { %v630_v29 = vpop.f32.mrf.mxu1 }
  0xed   : > { %v434_v31 = vpop.f32.mrf.mxu0 }
  0xee   : > { %v441_v33 = vadd.f32 %v434_v31, %v353_v30 }
  0xef   : > { %v641_v34 = vpop.f32.mrf.mxu0 }
  0xf0   : > { %v450_v36 = vadd.f32 %v588_v32, %v441_v33 }
  0xf1   : > { %v437_v37 = vpop.f32.mrf.mxu0 }
  0xf2   : > { %v452_v38 = vmax.f32 %v450_v36, 0.0  ;;  %v442_v39 = vadd.f32 %v437_v37, %v356_v35 }
  0xf3   : > { %v642_v40 = vpop.f32.mrf.mxu0 }
  0xf4   : > { %454 = vst [vmem:[%s192_s26] sm:$0xff] %v452_v38  ;;  %v451_v41 = vadd.f32 %v588_v32, %v442_v39 }
  0xf6   : > { %v453_v42 = vmax.f32 %v451_v41, 0.0 }
  0xf8   : > { %455 = vst [vmem:[%s192_s26 + $0x8] sm:$0xff] %v453_v42 }
  0xf9 PF: > { %s13_s14 = sadd.s32 1, %s704_s14   ;;  %s814_s12 = smov %s700_s13 }
  0xfa   : > { %p10_p5 = scmp.ge.s32.totalorder %s13_s14, 4   ;;  %s815_s13 = smov %s817_s15 }
  0xfc   :  { %12 = sbr.rel (!%p10_p5) target bundleno = 2 (0x2), region = 67 }

</bundles_post_ra>
